<compile_context>
chip_gen: v7x
topology: tpu7x:2x2x1
jax: 0.10.0
libtpu: 0.0.40
codegen_flags: <defaults>
</compile_context>

<pallas_src>
import functools
import math

import numpy as np
import jax
import jax.numpy as jnp
from jax.experimental import pallas as pl
from jax.experimental.pallas import tpu as pltpu


def _pack_row_toeplitz(w, w_in_pad, w_out):
    """Pack conv weights (K, K, Cin, Cout) into per-kh row-Toeplitz matmul
    operands B of shape (K, w_in_pad*Cin, w_out*Cout) such that

        B[kh, (wo + kw)*Cin + c, wo*Cout + co] = w[kh, kw, c, co]

    With the padded input row flattened as (w_in_pad*Cin,) this turns the whole
    (kw, cin) reduction and the output w axis of one conv row into a single
    lane-dense matmul:  out_row = sum_kh  in_row[kh] @ B[kh].
    """
    K1, K2, cin, cout = w.shape
    w_np = np.asarray(jax.device_get(w), dtype=np.float32)
    B = np.zeros((K1, w_in_pad * cin, w_out * cout), np.float32)
    for kh in range(K1):
        for kw in range(K2):
            blk = w_np[kh, kw]                      # (Cin, Cout)
            for wo in range(w_out):
                r = (wo + kw) * cin
                c = wo * cout
                B[kh, r:r + cin, c:c + cout] = blk
    return jnp.asarray(B)


def _conv_block_kernel(x_ref, B1_ref, b1_ref, B2_ref, b2_ref, o_ref,
                       xpad_ref, hpad_ref, *, K, pad, H, W, Cin, Cout):
    """Fused (Conv2d -> ReLU -> Conv2d -> ReLU) for one batch element.

    x_ref   : (1, H, W*Cin)              lane-flattened NHWC input tile
    B1_ref  : (K, Wp1*Cin,  W1*Cout)     conv1 row-Toeplitz weights (resident)
    b1_ref  : (1, W1*Cout)               conv1 bias, tiled over w
    B2_ref  : (K, Wp2*Cout, W2*Cout)     conv2 row-Toeplitz weights (resident)
    b2_ref  : (1, W2*Cout)               conv2 bias, tiled over w
    o_ref   : (1, H2, W2*Cout)           lane-flattened output tile
    xpad_ref: (Hp1, Wp1*Cin)   VMEM      zero-padded conv1 input
    hpad_ref: (Hp2, Wp2*Cout)  VMEM      zero-padded conv2 input (never in HBM)
    """
    Hp1, Wp1 = H + 2 * pad, W + 2 * pad
    H1, W1 = Hp1 - K + 1, Wp1 - K + 1
    Hp2, Wp2 = H1 + 2 * pad, W1 + 2 * pad
    H2, W2 = Hp2 - K + 1, Wp2 - K + 1

    # ---- stage 1: zero only the halo strips, then write the interior ----
    if pad > 0:
        xpad_ref[0:pad, :] = jnp.zeros((pad, Wp1 * Cin), xpad_ref.dtype)
        xpad_ref[pad + H:Hp1, :] = jnp.zeros((Hp1 - pad - H, Wp1 * Cin), xpad_ref.dtype)
        xpad_ref[:, 0:pad * Cin] = jnp.zeros((Hp1, pad * Cin), xpad_ref.dtype)
        xpad_ref[:, (pad + W) * Cin:Wp1 * Cin] = jnp.zeros(
            (Hp1, (Wp1 - pad - W) * Cin), xpad_ref.dtype)
    xpad_ref[pad:pad + H, pad * Cin:(pad + W) * Cin] = x_ref[0].astype(xpad_ref.dtype)

    # ---- conv1: K row-shifted MXU matmuls, (kw, cin, w) folded in; f32 acc ----
    acc1 = jnp.zeros((H1, W1 * Cout), jnp.float32)
    for kh in range(K):
        acc1 = acc1 + jnp.dot(xpad_ref[kh:kh + H1, :], B1_ref[kh],
                              preferred_element_type=jnp.float32)
    h1 = jnp.maximum(acc1 + b1_ref[...], 0.0)        # (H1, W1*Cout), lane dense

    # ---- stage 2: intermediate stays in VMEM; halo-only zeroing again ----
    if pad > 0:
        hpad_ref[0:pad, :] = jnp.zeros((pad, Wp2 * Cout), hpad_ref.dtype)
        hpad_ref[pad + H1:Hp2, :] = jnp.zeros((Hp2 - pad - H1, Wp2 * Cout), hpad_ref.dtype)
        hpad_ref[:, 0:pad * Cout] = jnp.zeros((Hp2, pad * Cout), hpad_ref.dtype)
        hpad_ref[:, (pad + W1) * Cout:Wp2 * Cout] = jnp.zeros(
            (Hp2, (Wp2 - pad - W1) * Cout), hpad_ref.dtype)
    hpad_ref[pad:pad + H1, pad * Cout:(pad + W1) * Cout] = h1

    # ---- conv2: same structure ----
    acc2 = jnp.zeros((H2, W2 * Cout), jnp.float32)
    for kh in range(K):
        acc2 = acc2 + jnp.dot(hpad_ref[kh:kh + H2, :], B2_ref[kh],
                              preferred_element_type=jnp.float32)
    h2 = jnp.maximum(acc2 + b2_ref[...], 0.0)        # (H2, W2*Cout)

    # Lane-dense 2D slab store (no reshape, no masked sub-128 stores at W2*Cout=128).
    o_ref[0] = h2.astype(o_ref.dtype)


def conv_block_forward_nhwc(x_nhwc, w1, b1, w2, b2, *, K, pad):
    """Fused double conv+ReLU. x_nhwc: (N,H,W,Cin); w: (K,K,Cin/Cout,Cout)."""
    N, H, W, Cin = x_nhwc.shape
    Cout = w1.shape[-1]
    Hp1, Wp1 = H + 2 * pad, W + 2 * pad
    H1, W1 = Hp1 - K + 1, Wp1 - K + 1
    Hp2, Wp2 = H1 + 2 * pad, W1 + 2 * pad
    H2, W2 = Hp2 - K + 1, Wp2 - K + 1
    assert H1 > 0 and W1 > 0 and H2 > 0 and W2 > 0, "spatial dims too small for kernel"

    # Host-side packing: lane-dense row-Toeplitz weights + w-tiled biases.
    B1 = _pack_row_toeplitz(w1, Wp1, W1)              # (K, Wp1*Cin,  W1*Cout)
    B2 = _pack_row_toeplitz(w2, Wp2, W2)              # (K, Wp2*Cout, W2*Cout)
    b1_flat = jnp.tile(b1, W1).reshape(1, W1 * Cout)
    b2_flat = jnp.tile(b2, W2).reshape(1, W2 * Cout)

    x_flat = x_nhwc.reshape(N, H, W * Cin)            # lane-dense input layout

    kernel = functools.partial(
        _conv_block_kernel, K=K, pad=pad, H=H, W=W, Cin=Cin, Cout=Cout)

    out_flat = pl.pallas_call(
        kernel,
        out_shape=jax.ShapeDtypeStruct((N, H2, W2 * Cout), x_nhwc.dtype),
        grid_spec=pltpu.PrefetchScalarGridSpec(
            num_scalar_prefetch=0,
            grid=(N,),
            in_specs=[
                pl.BlockSpec((1, H, W * Cin), lambda n: (n, 0, 0)),
                pl.BlockSpec((K, Wp1 * Cin, W1 * Cout), lambda n: (0, 0, 0)),   # resident
                pl.BlockSpec((1, W1 * Cout), lambda n: (0, 0)),
                pl.BlockSpec((K, Wp2 * Cout, W2 * Cout), lambda n: (0, 0, 0)),  # resident
                pl.BlockSpec((1, W2 * Cout), lambda n: (0, 0)),
            ],
            out_specs=pl.BlockSpec((1, H2, W2 * Cout), lambda n: (n, 0, 0)),
            scratch_shapes=[
                pltpu.VMEM((Hp1, Wp1 * Cin), jnp.float32),   # padded conv1 input
                pltpu.VMEM((Hp2, Wp2 * Cout), jnp.float32),  # padded intermediate
            ],
        ),
        compiler_params=pltpu.CompilerParams(dimension_semantics=("parallel",)),
    )(x_flat, B1, b1_flat, B2, b2_flat)

    return out_flat.reshape(N, H2, W2, Cout)


class ConvBlockPallas:
    """Mirror of the PyTorch ConvBlock: (Conv2d -> ReLU) x 2, 'same'/'valid' padding."""

    def __init__(self, in_channels, out_channels, kernel_size, padding="same", key=None):
        if padding in ("VALID", "valid"):
            self.pad = 0
        elif padding in ("SAME", "same"):
            # NOTE: matches PyTorch padding=K//2 only for odd K (as in the module's usage).
            self.pad = kernel_size // 2
        else:
            raise RuntimeError("invalid string value for padding")
        self.k = kernel_size
        key = jax.random.PRNGKey(0) if key is None else key
        k1, k2, k3, k4 = jax.random.split(key, 4)

        def kaiming_normal(k, kh, kw, cin, cout):
            # kaiming_normal_(nonlinearity='relu'): std = sqrt(2 / fan_in)
            fan_in = cin * kh * kw
            std = math.sqrt(2.0 / fan_in)
            return jax.random.normal(k, (kh, kw, cin, cout), jnp.float32) * std

        def default_bias(k, kh, kw, cin, cout):
            # PyTorch Conv2d default bias: U(-1/sqrt(fan_in), 1/sqrt(fan_in))
            fan_in = cin * kh * kw
            bound = 1.0 / math.sqrt(fan_in)
            return jax.random.uniform(k, (cout,), jnp.float32, -bound, bound)

        ks = kernel_size
        self.w1 = kaiming_normal(k1, ks, ks, in_channels, out_channels)
        self.b1 = default_bias(k2, ks, ks, in_channels, out_channels)
        self.w2 = kaiming_normal(k3, ks, ks, out_channels, out_channels)
        self.b2 = default_bias(k4, ks, ks, out_channels, out_channels)

    def forward_nhwc(self, x_nhwc):
        """Preferred entry point: keeps NHWC end-to-end (no transposes)."""
        return conv_block_forward_nhwc(
            x_nhwc, self.w1, self.b1, self.w2, self.b2, K=self.k, pad=self.pad)

    def __call__(self, x_nchw):
        # NCHW boundary kept only to match the PyTorch module's semantics; a full
        # U-Net should call forward_nhwc directly and stay NHWC end-to-end.
        x = jnp.transpose(x_nchw, (0, 2, 3, 1))
        y = self.forward_nhwc(x)
        return jnp.transpose(y, (0, 3, 1, 2))


def _reference_forward(x_nchw, block):
    """Pure-JAX reference (lax conv) for a correctness check."""
    def conv(x, w, b, pad):
        # w: (KH, KW, Cin, Cout) -> lax expects (Cout, Cin, KH, KW) for NCHW/OIHW
        w_oihw = jnp.transpose(w, (3, 2, 0, 1))
        y = jax.lax.conv_general_dilated(
            x, w_oihw, window_strides=(1, 1),
            padding=[(pad, pad), (pad, pad)],
            dimension_numbers=("NCHW", "OIHW", "NCHW"),
        )
        return jnp.maximum(y + b[None, :, None, None], 0.0)

    y = conv(x_nchw, block.w1, block.b1, block.pad)
    y = conv(y, block.w2, block.b2, block.pad)
    return y


if __name__ == "__main__":
    key = jax.random.PRNGKey(0)
    kx, kp = jax.random.split(key)

    # Small shapes consistent with the module: batch=2, in_ch=4, out_ch=8,
    # 16x16 spatial, 3x3 kernel, 'same' padding.  (W*Cout = 128 -> lane dense.)
    N, Cin, H, W = 2, 4, 16, 16
    Cout, K = 8, 3
    x = jax.random.normal(kx, (N, Cin, H, W), jnp.float32)

    block = ConvBlockPallas(Cin, Cout, K, padding="same", key=kp)

    out = jax.block_until_ready(block(x))
    ref = jax.block_until_ready(_reference_forward(x, block))

    assert out.shape == (N, Cout, H, W), out.shape
    assert jnp.allclose(out, ref, atol=1e-4, rtol=1e-4), float(jnp.max(jnp.abs(out - ref)))

    print("KERNEL_OK")
</pallas_src>

<mosaic_0001>
module attributes {stable_mosaic.version = 11 : i64} {
  func.func @_conv_block_kernel(%arg0: i32, %arg1: memref<1x16x64xf32, #tpu.memory_space<vmem>>, %arg2: memref<3x72x128xf32, #tpu.memory_space<vmem>>, %arg3: memref<1x128xf32, #tpu.memory_space<vmem>>, %arg4: memref<3x144x128xf32, #tpu.memory_space<vmem>>, %arg5: memref<1x128xf32, #tpu.memory_space<vmem>>, %arg6: memref<1x16x128xf32, #tpu.memory_space<vmem>>, %arg7: memref<18x72xf32, #tpu.memory_space<vmem>>, %arg8: memref<18x144xf32, #tpu.memory_space<vmem>>) attributes {dimension_semantics = [#tpu.dimension_semantics<parallel>], iteration_bounds = array<i64: 2>, scalar_prefetch = 0 : i64, scratch_operands = 2 : i64, tpu.core_type = #tpu.core_type<tc>, window_params = [{transform_indices = @transform_0, window_bounds = array<i64: 1, 16, 64>}, {pipeline_mode = #tpu.pipeline_mode<synchronous>, transform_indices = @transform_1, window_bounds = array<i64: 3, 72, 128>}, {pipeline_mode = #tpu.pipeline_mode<synchronous>, transform_indices = @transform_2, window_bounds = array<i64: 1, 128>}, {pipeline_mode = #tpu.pipeline_mode<synchronous>, transform_indices = @transform_3, window_bounds = array<i64: 3, 144, 128>}, {pipeline_mode = #tpu.pipeline_mode<synchronous>, transform_indices = @transform_4, window_bounds = array<i64: 1, 128>}, {transform_indices = @transform_5, window_bounds = array<i64: 1, 16, 128>}]} {
    %cst = arith.constant 0.000000e+00 : f32
    %0 = vector.broadcast %cst : f32 to vector<1x72xf32>
    %c0 = arith.constant 0 : index
    %c0_0 = arith.constant 0 : index
    %1 = vector.load %arg7[%c0, %c0_0] : memref<18x72xf32, #tpu.memory_space<vmem>>, vector<1x72xf32>
    tpu.vector_store %arg7[%c0, %c0_0], %0 {strides = array<i32>} : memref<18x72xf32, #tpu.memory_space<vmem>>, vector<1x72xf32>,
    %cst_1 = arith.constant 0.000000e+00 : f32
    %2 = vector.broadcast %cst_1 : f32 to vector<1x72xf32>
    %c17 = arith.constant 17 : index
    %c0_2 = arith.constant 0 : index
    %3 = vector.load %arg7[%c17, %c0_2] : memref<18x72xf32, #tpu.memory_space<vmem>>, vector<1x72xf32>
    tpu.vector_store %arg7[%c17, %c0_2], %2 {strides = array<i32>} : memref<18x72xf32, #tpu.memory_space<vmem>>, vector<1x72xf32>,
    %cst_3 = arith.constant 0.000000e+00 : f32
    %4 = vector.broadcast %cst_3 : f32 to vector<18x4xf32>
    %c0_4 = arith.constant 0 : index
    %c0_5 = arith.constant 0 : index
    %5 = vector.load %arg7[%c0_4, %c0_5] : memref<18x72xf32, #tpu.memory_space<vmem>>, vector<18x4xf32>
    tpu.vector_store %arg7[%c0_4, %c0_5], %4 {strides = array<i32>} : memref<18x72xf32, #tpu.memory_space<vmem>>, vector<18x4xf32>,
    %cst_6 = arith.constant 0.000000e+00 : f32
    %6 = vector.broadcast %cst_6 : f32 to vector<18x4xf32>
    %c0_7 = arith.constant 0 : index
    %c68 = arith.constant 68 : index
    %7 = vector.load %arg7[%c0_7, %c68] : memref<18x72xf32, #tpu.memory_space<vmem>>, vector<18x4xf32>
    tpu.vector_store %arg7[%c0_7, %c68], %6 {strides = array<i32>} : memref<18x72xf32, #tpu.memory_space<vmem>>, vector<18x4xf32>,
    %c0_8 = arith.constant 0 : index
    %c0_9 = arith.constant 0 : index
    %c0_10 = arith.constant 0 : index
    %8 = vector.load %arg1[%c0_8, %c0_9, %c0_10] : memref<1x16x64xf32, #tpu.memory_space<vmem>>, vector<1x16x64xf32>
    %9 = vector.shape_cast %8 : vector<1x16x64xf32> to vector<16x64xf32>
    %c1 = arith.constant 1 : index
    %c4 = arith.constant 4 : index
    %10 = vector.load %arg7[%c1, %c4] : memref<18x72xf32, #tpu.memory_space<vmem>>, vector<16x64xf32>
    tpu.vector_store %arg7[%c1, %c4], %9 {strides = array<i32>} : memref<18x72xf32, #tpu.memory_space<vmem>>, vector<16x64xf32>,
    %cst_11 = arith.constant 0.000000e+00 : f32
    %11 = vector.broadcast %cst_11 : f32 to vector<16x128xf32>
    %c0_12 = arith.constant 0 : index
    %c0_13 = arith.constant 0 : index
    %12 = vector.load %arg7[%c0_12, %c0_13] : memref<18x72xf32, #tpu.memory_space<vmem>>, vector<16x72xf32>
    %c0_14 = arith.constant 0 : index
    %c0_15 = arith.constant 0 : index
    %c0_16 = arith.constant 0 : index
    %13 = vector.load %arg2[%c0_14, %c0_15, %c0_16] : memref<3x72x128xf32, #tpu.memory_space<vmem>>, vector<1x72x128xf32>
    %14 = vector.shape_cast %13 : vector<1x72x128xf32> to vector<72x128xf32>
    %cst_17 = arith.constant dense<0.000000e+00> : vector<16x128xf32>
    %15 = tpu.matmul %12, %14, %cst_17 {dimension_numbers = #tpu.dot_dimension_numbers<[1], [0], [0], [1], [0, 0, 1, 1], [], []>} : vector<16x72xf32>, vector<72x128xf32>, vector<16x128xf32> -> vector<16x128xf32>
    %16 = arith.addf %11, %15 : vector<16x128xf32>
    %c1_18 = arith.constant 1 : index
    %c0_19 = arith.constant 0 : index
    %17 = vector.load %arg7[%c1_18, %c0_19] : memref<18x72xf32, #tpu.memory_space<vmem>>, vector<16x72xf32>
    %c1_20 = arith.constant 1 : index
    %c0_21 = arith.constant 0 : index
    %c0_22 = arith.constant 0 : index
    %18 = vector.load %arg2[%c1_20, %c0_21, %c0_22] : memref<3x72x128xf32, #tpu.memory_space<vmem>>, vector<1x72x128xf32>
    %19 = vector.shape_cast %18 : vector<1x72x128xf32> to vector<72x128xf32>
    %cst_23 = arith.constant dense<0.000000e+00> : vector<16x128xf32>
    %20 = tpu.matmul %17, %19, %cst_23 {dimension_numbers = #tpu.dot_dimension_numbers<[1], [0], [0], [1], [0, 0, 1, 1], [], []>} : vector<16x72xf32>, vector<72x128xf32>, vector<16x128xf32> -> vector<16x128xf32>
    %21 = arith.addf %16, %20 : vector<16x128xf32>
    %c2 = arith.constant 2 : index
    %c0_24 = arith.constant 0 : index
    %22 = vector.load %arg7[%c2, %c0_24] : memref<18x72xf32, #tpu.memory_space<vmem>>, vector<16x72xf32>
    %c2_25 = arith.constant 2 : index
    %c0_26 = arith.constant 0 : index
    %c0_27 = arith.constant 0 : index
    %23 = vector.load %arg2[%c2_25, %c0_26, %c0_27] : memref<3x72x128xf32, #tpu.memory_space<vmem>>, vector<1x72x128xf32>
    %24 = vector.shape_cast %23 : vector<1x72x128xf32> to vector<72x128xf32>
    %cst_28 = arith.constant dense<0.000000e+00> : vector<16x128xf32>
    %25 = tpu.matmul %22, %24, %cst_28 {dimension_numbers = #tpu.dot_dimension_numbers<[1], [0], [0], [1], [0, 0, 1, 1], [], []>} : vector<16x72xf32>, vector<72x128xf32>, vector<16x128xf32> -> vector<16x128xf32>
    %26 = arith.addf %21, %25 : vector<16x128xf32>
    %c0_29 = arith.constant 0 : index
    %c0_30 = arith.constant 0 : index
    %27 = vector.load %arg3[%c0_29, %c0_30] : memref<1x128xf32, #tpu.memory_space<vmem>>, vector<1x128xf32>
    %28 = vector.broadcast %27 : vector<1x128xf32> to vector<16x128xf32>
    %29 = arith.addf %26, %28 : vector<16x128xf32>
    %cst_31 = arith.constant 0.000000e+00 : f32
    %30 = vector.broadcast %cst_31 : f32 to vector<16x128xf32>
    %31 = arith.maximumf %29, %30 : vector<16x128xf32>
    %cst_32 = arith.constant 0.000000e+00 : f32
    %32 = vector.broadcast %cst_32 : f32 to vector<1x144xf32>
    %c0_33 = arith.constant 0 : index
    %c0_34 = arith.constant 0 : index
    %33 = vector.load %arg8[%c0_33, %c0_34] : memref<18x144xf32, #tpu.memory_space<vmem>>, vector<1x144xf32>
    tpu.vector_store %arg8[%c0_33, %c0_34], %32 {strides = array<i32>} : memref<18x144xf32, #tpu.memory_space<vmem>>, vector<1x144xf32>,
    %cst_35 = arith.constant 0.000000e+00 : f32
    %34 = vector.broadcast %cst_35 : f32 to vector<1x144xf32>
    %c17_36 = arith.constant 17 : index
    %c0_37 = arith.constant 0 : index
    %35 = vector.load %arg8[%c17_36, %c0_37] : memref<18x144xf32, #tpu.memory_space<vmem>>, vector<1x144xf32>
    tpu.vector_store %arg8[%c17_36, %c0_37], %34 {strides = array<i32>} : memref<18x144xf32, #tpu.memory_space<vmem>>, vector<1x144xf32>,
    %cst_38 = arith.constant 0.000000e+00 : f32
    %36 = vector.broadcast %cst_38 : f32 to vector<18x8xf32>
    %c0_39 = arith.constant 0 : index
    %c0_40 = arith.constant 0 : index
    %37 = vector.load %arg8[%c0_39, %c0_40] : memref<18x144xf32, #tpu.memory_space<vmem>>, vector<18x8xf32>
    tpu.vector_store %arg8[%c0_39, %c0_40], %36 {strides = array<i32>} : memref<18x144xf32, #tpu.memory_space<vmem>>, vector<18x8xf32>,
    %cst_41 = arith.constant 0.000000e+00 : f32
    %38 = vector.broadcast %cst_41 : f32 to vector<18x8xf32>
    %c0_42 = arith.constant 0 : index
    %c136 = arith.constant 136 : index
    %39 = vector.load %arg8[%c0_42, %c136] : memref<18x144xf32, #tpu.memory_space<vmem>>, vector<18x8xf32>
    tpu.vector_store %arg8[%c0_42, %c136], %38 {strides = array<i32>} : memref<18x144xf32, #tpu.memory_space<vmem>>, vector<18x8xf32>,
    %c1_43 = arith.constant 1 : index
    %c8 = arith.constant 8 : index
    %40 = vector.load %arg8[%c1_43, %c8] : memref<18x144xf32, #tpu.memory_space<vmem>>, vector<16x128xf32>
    tpu.vector_store %arg8[%c1_43, %c8], %31 {strides = array<i32>} : memref<18x144xf32, #tpu.memory_space<vmem>>, vector<16x128xf32>,
    %cst_44 = arith.constant 0.000000e+00 : f32
    %41 = vector.broadcast %cst_44 : f32 to vector<16x128xf32>
    %c0_45 = arith.constant 0 : index
    %c0_46 = arith.constant 0 : index
    %42 = vector.load %arg8[%c0_45, %c0_46] : memref<18x144xf32, #tpu.memory_space<vmem>>, vector<16x144xf32>
    %c0_47 = arith.constant 0 : index
    %c0_48 = arith.constant 0 : index
    %c0_49 = arith.constant 0 : index
    %43 = vector.load %arg4[%c0_47, %c0_48, %c0_49] : memref<3x144x128xf32, #tpu.memory_space<vmem>>, vector<1x144x128xf32>
    %44 = vector.shape_cast %43 : vector<1x144x128xf32> to vector<144x128xf32>
    %cst_50 = arith.constant dense<0.000000e+00> : vector<16x128xf32>
    %45 = tpu.matmul %42, %44, %cst_50 {dimension_numbers = #tpu.dot_dimension_numbers<[1], [0], [0], [1], [0, 0, 1, 1], [], []>} : vector<16x144xf32>, vector<144x128xf32>, vector<16x128xf32> -> vector<16x128xf32>
    %46 = arith.addf %41, %45 : vector<16x128xf32>
    %c1_51 = arith.constant 1 : index
    %c0_52 = arith.constant 0 : index
    %47 = vector.load %arg8[%c1_51, %c0_52] : memref<18x144xf32, #tpu.memory_space<vmem>>, vector<16x144xf32>
    %c1_53 = arith.constant 1 : index
    %c0_54 = arith.constant 0 : index
    %c0_55 = arith.constant 0 : index
    %48 = vector.load %arg4[%c1_53, %c0_54, %c0_55] : memref<3x144x128xf32, #tpu.memory_space<vmem>>, vector<1x144x128xf32>
    %49 = vector.shape_cast %48 : vector<1x144x128xf32> to vector<144x128xf32>
    %cst_56 = arith.constant dense<0.000000e+00> : vector<16x128xf32>
    %50 = tpu.matmul %47, %49, %cst_56 {dimension_numbers = #tpu.dot_dimension_numbers<[1], [0], [0], [1], [0, 0, 1, 1], [], []>} : vector<16x144xf32>, vector<144x128xf32>, vector<16x128xf32> -> vector<16x128xf32>
    %51 = arith.addf %46, %50 : vector<16x128xf32>
    %c2_57 = arith.constant 2 : index
    %c0_58 = arith.constant 0 : index
    %52 = vector.load %arg8[%c2_57, %c0_58] : memref<18x144xf32, #tpu.memory_space<vmem>>, vector<16x144xf32>
    %c2_59 = arith.constant 2 : index
    %c0_60 = arith.constant 0 : index
    %c0_61 = arith.constant 0 : index
    %53 = vector.load %arg4[%c2_59, %c0_60, %c0_61] : memref<3x144x128xf32, #tpu.memory_space<vmem>>, vector<1x144x128xf32>
    %54 = vector.shape_cast %53 : vector<1x144x128xf32> to vector<144x128xf32>
    %cst_62 = arith.constant dense<0.000000e+00> : vector<16x128xf32>
    %55 = tpu.matmul %52, %54, %cst_62 {dimension_numbers = #tpu.dot_dimension_numbers<[1], [0], [0], [1], [0, 0, 1, 1], [], []>} : vector<16x144xf32>, vector<144x128xf32>, vector<16x128xf32> -> vector<16x128xf32>
    %56 = arith.addf %51, %55 : vector<16x128xf32>
    %c0_63 = arith.constant 0 : index
    %c0_64 = arith.constant 0 : index
    %57 = vector.load %arg5[%c0_63, %c0_64] : memref<1x128xf32, #tpu.memory_space<vmem>>, vector<1x128xf32>
    %58 = vector.broadcast %57 : vector<1x128xf32> to vector<16x128xf32>
    %59 = arith.addf %56, %58 : vector<16x128xf32>
    %cst_65 = arith.constant 0.000000e+00 : f32
    %60 = vector.broadcast %cst_65 : f32 to vector<16x128xf32>
    %61 = arith.maximumf %59, %60 : vector<16x128xf32>
    %c0_66 = arith.constant 0 : index
    %c0_67 = arith.constant 0 : index
    %c0_68 = arith.constant 0 : index
    %62 = vector.load %arg6[%c0_66, %c0_67, %c0_68] : memref<1x16x128xf32, #tpu.memory_space<vmem>>, vector<1x16x128xf32>
    %63 = vector.shape_cast %62 : vector<1x16x128xf32> to vector<16x128xf32>
    %64 = vector.shape_cast %61 : vector<16x128xf32> to vector<1x16x128xf32>
    tpu.vector_store %arg6[%c0_66, %c0_67, %c0_68], %64 {strides = array<i32>} : memref<1x16x128xf32, #tpu.memory_space<vmem>>, vector<1x16x128xf32>,
    return
  }
  func.func @transform_0(%arg0: i32) -> (i32, i32, i32) {
    %c0_i32 = arith.constant 0 : i32
    %c0_i32_0 = arith.constant 0 : i32
    %c0_i32_1 = arith.constant 0 : i32
    return %arg0, %c0_i32, %c0_i32_0 : i32, i32, i32
  }
  func.func @transform_1(%arg0: i32) -> (i32, i32, i32) {
    %c0_i32 = arith.constant 0 : i32
    %c0_i32_0 = arith.constant 0 : i32
    %c0_i32_1 = arith.constant 0 : i32
    %c0_i32_2 = arith.constant 0 : i32
    return %c0_i32, %c0_i32_0, %c0_i32_1 : i32, i32, i32
  }
  func.func @transform_2(%arg0: i32) -> (i32, i32) {
    %c0_i32 = arith.constant 0 : i32
    %c0_i32_0 = arith.constant 0 : i32
    %c0_i32_1 = arith.constant 0 : i32
    return %c0_i32, %c0_i32_0 : i32, i32
  }
  func.func @transform_3(%arg0: i32) -> (i32, i32, i32) {
    %c0_i32 = arith.constant 0 : i32
    %c0_i32_0 = arith.constant 0 : i32
    %c0_i32_1 = arith.constant 0 : i32
    %c0_i32_2 = arith.constant 0 : i32
    return %c0_i32, %c0_i32_0, %c0_i32_1 : i32, i32, i32
  }
  func.func @transform_4(%arg0: i32) -> (i32, i32) {
    %c0_i32 = arith.constant 0 : i32
    %c0_i32_0 = arith.constant 0 : i32
    %c0_i32_1 = arith.constant 0 : i32
    return %c0_i32, %c0_i32_0 : i32, i32
  }
  func.func @transform_5(%arg0: i32) -> (i32, i32, i32) {
    %c0_i32 = arith.constant 0 : i32
    %c0_i32_0 = arith.constant 0 : i32
    %c0_i32_1 = arith.constant 0 : i32
    return %arg0, %c0_i32, %c0_i32_0 : i32, i32, i32
  }
}

</mosaic_0001>

<bundles_post_ra>
// kernel: tpu_custom_call.1
= control target key start
LH: loop header
LB: loop body
LE: loop exit
PB: predicated region body
PF: predicated region fallthrough
CT: control target
= control target key end

     0   :  { %10 = vsyncpa [#allocation5], 0  ;;  %s1968_s0 = inlined_call_operand.hbm [shape: f32[2,16,64], index: 0, kind: input, shape index: {}]   ;;  %s1969_s1 = inlined_call_operand.hbm [shape: f32[3,72,128], index: 1, kind: input, shape index: {}]   ;;  %s1970_s2 = inlined_call_operand.vmem [shape: f32[1,128], index: 2, kind: input, shape index: {}]   ;;  %s1971_s3 = inlined_call_operand.hbm [shape: f32[3,144,128], index: 3, kind: input, shape index: {}]   ;;  %s1972_s4 = inlined_call_operand.vmem [shape: f32[1,128], index: 4, kind: input, shape index: {}]   ;;  %s1973_s5 = inlined_call_operand.hbm [shape: f32[2,16,128], index: 5, kind: output, shape index: {}]  }
   0x1   :  { %12 = vsyncpa [#allocation5 + $0x1], 0 }
   0x2   :  { %13 = vsyncpa [#allocation8], 0 }
   0x3   :  { %14 = vsyncpa [#allocation6], 0 }
   0x4   :  { %16 = vsyncpa [#allocation6 + $0x1], 0  ;;  %s1635_s18 = smov 0   ;;  %s1637_s19 = smov 0  }
   0x5   :  { %s1639_s20 = smov 0   ;;  %s1641_s21 = smov 0  }
   0x6 LB: > { %s1656_s22 = sadd.s32 4294967295, %s1592_s21   ;;  %s1099_s23 = sadd.s32 4294967294, %s1592_s21   ;;  %s1592_s21 = sphi %s1641_s21, %s1993_s21   ;;  %s1588_s20 = sphi %s1639_s20, %s1992_s20   ;;  %s1584_s19 = sphi %s1637_s19, %s1991_s19   ;;  %s1580_s18 = sphi %s1635_s18, %s1990_s18  }
   0x7   : > { %p42_p0 = scmp.ne.s32.totalorder %s1584_s19, %s1580_s18  ;;  %p1974_p1 = scmp.eq.s32.totalorder %s1656_s22, 0 }
   0x8   : > { %p156_p3 = scmp.eq.s32.totalorder %s1099_s23, 1  ;;  %p1100_p5 = scmp.ge.s32.totalorder %s1592_s21, 1 }
   0x9   : > { %p1665_p4 = por %p1974_p1, %p42_p0  ;;  %p163_p7 = scmp.lt.s32.totalorder %s1592_s21, 3 }
   0xa   : > { %p1670_p6 = por %p156_p3, %p42_p0  ;;  %s1594_s27 = smov [#allocation7]  }
   0xb   : > { %s1977_s24 = scalar_select %p1665_p4, 1, 0 }
   0xc   : > { %s1978_s25 = scalar_select %p1670_p6, 1, 0 }
   0xd   : > { %p1675_p8 = pnand %p1100_p5, %p163_p7  ;;  %s175_s28 = sshll.u32 %s1594_s27, 4  ;;  %s1679_s28 = int_to_ptr.vmem [resolvable:$true] %s175_s28 }
   0xe   : > { %s1595_s30 = smov [#allocation9]   ;;  %s1436_s9 = scalar_lea.hbm %s1969_s1, 3456 }
   0xf   : > { %p1374_p9 = pneg %p1675_p8  ;;  %s191_s6 = sshll.u32 %s1595_s30, 4  ;;  %s1690_s6 = int_to_ptr.vmem [resolvable:$true] %s191_s6 }
  0x10   : > { %p1437_p12 = scmp.ne.s32.totalorder %s1969_s1, %s1436_s9  ;;  %p1443_p5 = scmp.lt.u32.totalorder %s1436_s9, %s1969_s1 }
  0x11   : > { %p1686_p11 = pnand %p1374_p9, %p1974_p1 }
  0x13   : > { %p1438_p13 = pneg %p1686_p11 }
  0x15   : > { %p1439_p0 = pnand %p1438_p13, %p1437_p12 }
  0x17   : > { %p1440_p3 = pneg %p1439_p0 }
  0x19   : > { %p1445_p7 = pnand %p1443_p5, %p1440_p3 }
  0x1b   : > { %1448 = shalt.err (!%p1445_p7)
}
  0x1c   : > { %s1449_s14 = scalar_lea.vmem %s1679_s28, 3456  ;;  %p1457_p2 = scmp.lt.s32.totalorder %s1679_s28, %s1679_s28 }
  0x1d   : > { %p1450_p9 = scmp.ne.s32.totalorder %s1679_s28, %s1449_s14  ;;  %p1458_p12 = scmp.lt.s32.totalorder %s1449_s14, %s1449_s14 }
  0x1f   : > { %p1452_p10 = pnand %p1450_p9, %p1438_p13  ;;  %p1459_p0 = por %p1458_p12, %p1457_p2 }
  0x21   : > { %p1453_p1 = pneg %p1452_p10 }
  0x23   : > { %p1460_p6 = pnand %p1459_p0, %p1453_p1 }
  0x25   : > { %1463 = shalt.err (!%p1460_p6)
}
  0x26   : > { %s1596_s15 = smov 128   ;;  %s1597_s16 = smov 8  }
  0x27   : > { %1377 = dma.hbm_to_vmem [thread:$0]  (!%p1686_p11), %s1969_s1, 3456, %s1679_s28, [#allocation8], %s1596_s15, %s1596_s15, %s1597_s16  }
  0x28   : > { %s1464_s7 = scalar_lea.hbm %s1971_s3, 6912 }
  0x29   : > { %p1465_p1 = scmp.ne.s32.totalorder %s1971_s3, %s1464_s7  ;;  %p1471_p10 = scmp.lt.u32.totalorder %s1464_s7, %s1971_s3 }
  0x2b   : > { %p1467_p2 = pnand %p1465_p1, %p1438_p13 }
  0x2d   : > { %p1468_p6 = pneg %p1467_p2 }
  0x2f   : > { %p1473_p3 = pnand %p1471_p10, %p1468_p6 }
  0x31   : > { %1476 = shalt.err (!%p1473_p3)
}
  0x32   : > { %s1477_s28 = scalar_lea.vmem %s1690_s6, 6912  ;;  %p1485_p12 = scmp.lt.s32.totalorder %s1690_s6, %s1690_s6 }
  0x33   : > { %p1478_p5 = scmp.ne.s32.totalorder %s1690_s6, %s1477_s28  ;;  %p1486_p0 = scmp.lt.s32.totalorder %s1477_s28, %s1477_s28 }
  0x35   : > { %p1480_p7 = pnand %p1478_p5, %p1438_p13  ;;  %p1487_p1 = por %p1486_p0, %p1485_p12 }
  0x37   : > { %p1481_p9 = pneg %p1480_p7 }
  0x39   : > { %p1488_p2 = pnand %p1487_p1, %p1481_p9 }
  0x3b   : > { %1491 = shalt.err (!%p1488_p2)
}
  0x3c   : > { %1380 = dma.hbm_to_vmem [thread:$0]  (!%p1686_p11), %s1971_s3, 6912, %s1690_s6, [#allocation8], %s1596_s15, %s1596_s15, %s1597_s16  }
  0x3d   : > { %s1751_s29 = sadd.s32 1, %s1592_s21   ;;  %s29_s14 = sadd.s32 1, %s1588_s20 }
  0x3e   : > { %s26_s17 = ssub.s32 %s1592_s21, %s1751_s29  ;;  %p36_p13 = scmp.ne.s32.totalorder %s1588_s20, %s1584_s19 }
  0x3f   : > { %p27_p6 = scmp.eq.s32.totalorder %s26_s17, 0  ;;  %p37_p10 = scmp.eq.s32.totalorder %s1592_s21, 0 }
  0x40   : > { %p1981_p3 = scmp.eq.s32.totalorder %s1656_s22, 1  ;;  %p1391_p7 = scmp.lt.s32.totalorder %s1592_s21, 2 }
  0x41   : > { %s1767_s27 = scalar_select %p27_p6, %s1588_s20, %s29_s14  }
  0x42   : > { %p1761_p5 = por %p1981_p3, %p36_p13  ;;  %p38_p9 = por %p37_p10, %p36_p13 }
  0x43   : > { %s208_s30 = sand.u32 1, %s1588_s20   ;;  %s1131_s6 = sshll.u32 %s1592_s21, 8 }
  0x44   : > { %s1982_s23 = scalar_select %p1761_p5, 1, 0 }
  0x45   : > { %s1104_s7 = sshll.u32 %s208_s30, 4  ;;  %s1774_s10 = scalar_lea.hbm %s1968_s0, %s1131_s6 }
  0x46   : > { %s212_s11 = scalar_lea.vmem [#allocation4], %s1104_s7  ;;  %p1778_p11 = pnand %p1391_p7, %p38_p9 }
  0x47   : > { %s219_s28 = sshll.u32 %s212_s11, 4  ;;  %s1782_s13 = scalar_lea.sflag [#allocation5], %s208_s30  ;;  %s1776_s28 = int_to_ptr.vmem [resolvable:$true] %s219_s28 }
  0x48   : > { %s1492_s14 = scalar_lea.hbm %s1774_s10, 256  ;;  %p1494_p0 = pneg %p1778_p11 }
  0x49   : > { %p1493_p12 = scmp.ne.s32.totalorder %s1774_s10, %s1492_s14  ;;  %s1497_s6 = scalar_lea.hbm %s1968_s0, 512 }
  0x4a   : > { %p1498_p13 = scmp.lt.u32.totalorder %s1774_s10, %s1968_s0  ;;  %p1499_p6 = scmp.lt.u32.totalorder %s1497_s6, %s1492_s14 }
  0x4b   : > { %p1495_p1 = pnand %p1494_p0, %p1493_p12  ;;  %p1501_p3 = scmp.lt.u32.totalorder %s1492_s14, %s1774_s10 }
  0x4c   : > { %p1500_p10 = por %p1499_p6, %p1498_p13 }
  0x4d   : > { %p1496_p2 = pneg %p1495_p1 }
  0x4e   : > { %p1502_p7 = por %p1501_p3, %p1500_p10 }
  0x50   : > { %p1503_p9 = pnand %p1502_p7, %p1496_p2 }
  0x52   : > { %1506 = shalt.err (!%p1503_p9)
}
  0x53   : > { %s1507_s30 = scalar_lea.vmem %s1776_s28, 256  ;;  %s1598_s11 = smov [#allocation4]  }
  0x54   : > { %p1508_p12 = scmp.ne.s32.totalorder %s1776_s28, %s1507_s30  ;;  %s1512_s17 = sshll.u32 %s1598_s11, 4  ;;  %s1513_s17 = int_to_ptr.vmem [resolvable:$false] %s1512_s17 }
  0x55   : > { %s1514_s7 = scalar_lea.vmem %s1513_s17, 512  ;;  %p1515_p4 = scmp.lt.s32.totalorder %s1776_s28, %s1513_s17 }
  0x56   : > { %p1510_p1 = pnand %p1508_p12, %p1494_p0  ;;  %p1516_p13 = scmp.lt.s32.totalorder %s1514_s7, %s1507_s30 }
  0x58   : > { %p1511_p5 = pneg %p1510_p1  ;;  %p1517_p6 = por %p1516_p13, %p1515_p4 }
  0x5a   : > { %p1518_p10 = pnand %p1517_p6, %p1511_p5 }
  0x5c   : > { %1521 = shalt.err (!%p1518_p10)
}
  0x5d   : > { %1384 = dma.hbm_to_vmem [thread:$0]  (!%p1778_p11), %s1774_s10, 256, %s1776_s28, %s1782_s13, %s1596_s15, %s1596_s15, %s1597_s16  }
  0x5e   : > { %231 = sbr.rel (%p1675_p8) target bundleno = 897 (0x381), region = 40  ;;  %s1816_s14 = sand.u32 (!%p1675_p8), 1, %s1584_s19  }
  0x5f   : > { %s1108_s6 = sshll.u32 (!%p1675_p8), %s1816_s14, 4  ;;  %s234_s8 = scalar_lea.sflag (!%p1675_p8), [#allocation5], %s1816_s14 }
  0x60   : > { %s237_s12 = scalar_lea.vmem (!%p1675_p8), [#allocation4], %s1108_s6  ;;  %p1984_p4 = scmp.ne.s32.totalorder (!%p1675_p8), %s1977_s24, 0 }
  0x65   : > { %1567 = dma.done.wait (%p1984_p4), %s234_s8, 256  }
  0x66   : > { %1569 = vsyncadd (%p1984_p4), %s234_s8, 4294967040  ;;  %p1985_p5 = scmp.eq.s32.totalorder %s1656_s22, 0 }
  0x68   : > { %1571 = dma.done.wait (%p1985_p5), [#allocation8], 10368   ;;  %p1986_p8 = pmov %p1985_p5 }
  0x69   : > { %vm272_vm0 = vcmask 581632   ;;  %vm275_vm1 = vcmask 31744   ;;  %vm280_vm2 = vcmask 589344   ;;  %v1599_v0 = vmov 0.0   ;;  %v285_v1 = vld [vmem:[%s237_s12] sm:$0xff]  ;;  %v312_v2 = vld [vmem:[#allocation7 + $0x48] sm:$0xff] }
  0x6a   : > { %1573 = vsyncadd (%p1986_p8), [#allocation8], 4294956928  ;;  %273 = vst.msk [vmem:[#allocation2] sm:$0x1] %vm272_vm0, %v1599_v0  ;;  %vm278_vm3 = vcmask 25600   ;;  %vm283_vm4 = vcmask 583200   ;;  %v590_v53 = vlaneseq }
  0x6b   : > { %277 = vst.msk [vmem:[#allocation2 + $0x8] sm:$0xff] %vm275_vm1, %v1599_v0  ;;  %276 = vst.msk [vmem:[#allocation2] sm:$0xff] %vm275_vm1, %v1599_v0  ;;  %s1600_s24 = smov 4   ;;  %v313_v3 = vld [vmem:[#allocation7 + $0x50] sm:$0xff]  ;;  %v314_v4 = vld [vmem:[#allocation7 + $0x58] sm:$0xff]  ;;  %vm295_vm5 = vcmask 556064  }
  0x6c   : > { %274 = vst.msk [vmem:[#allocation2 + $0x11] sm:$0x1] %vm272_vm0, %v1599_v0  ;;  %289 = vrot.lane.b32.xlu0 %v285_v1, %s1600_s24  ;;  %v315_v5 = vld [vmem:[#allocation7 + $0x60] sm:$0xff]  ;;  %v286_v6 = vld [vmem:[%s237_s12 + $0x8] sm:$0xff]  ;;  %v1229_v7 = vpack.c.bf16 %v313_v3, %v312_v2  ;;  %v317_v10 = vld [vmem:[#allocation7 + $0x70] sm:$0xff]  ;;  %vm321_vm6 = vcmask 588800  }
  0x6d   : > { %282 = vst.msk [vmem:[#allocation2 + $0x8] sm:$0xff] %vm280_vm2, %v1599_v0  ;;  %281 = vst.msk [vmem:[#allocation2] sm:$0xff] %vm280_vm2, %v1599_v0  ;;  %v1233_v8 = vpack.c.bf16 %v315_v5, %v314_v4  ;;  %v316_v9 = vld [vmem:[#allocation7 + $0x68] sm:$0xff]  ;;  %v318_v12 = vld [vmem:[#allocation7 + $0x78] sm:$0xff]  ;;  %v1601_v54 = vmov 0.0|0.0   ;;  %vm602_vm7 = vcmask 58368  }
  0x6e   : > { %279 = vst.msk [vmem:[#allocation2 + $0x10] sm:$0x3] %vm278_vm3, %v1599_v0  ;;  %1230 = vmatprep.subr.bf16.mxu0 %v1229_v7  ;;  %v1237_v11 = vpack.c.bf16 %v317_v10, %v316_v9  ;;  %v319_v13 = vld [vmem:[#allocation7 + $0x80] sm:$0xff]  ;;  %v320_v15 = vld [vmem:[#allocation7 + $0x88] sm:$0xff]  ;;  %v302_v22 = vld [vmem:[#allocation7 + $0x10] sm:$0xff]  ;;  %1277 = vmatprep.subr.bf16.mxu1 %v1601_v54  ;;  %vm607_vm8 = vcmask 123968  }
  0x6f   : > { %284 = vst.msk [vmem:[#allocation2 + $0x10] sm:$0x3] %vm283_vm4, %v1599_v0  ;;  %1232 = vmatpush3.bf16.msra.mxu0 %v1229_v7  ;;  %v1241_v14 = vpack.c.bf16 %v319_v13, %v318_v12  ;;  %v300_v16 = vld [vmem:[#allocation7] sm:$0xff]  ;;  %v301_v17 = vld [vmem:[#allocation7 + $0x8] sm:$0xff]  ;;  %v303_v23 = vld [vmem:[#allocation7 + $0x18] sm:$0xff]  ;;  %vm592_vm9 = vcmp.lt.s32.totalorder %v590_v53, 144 }
  0x70   : > { %291 = vrot.lane.b32.xlu0 %v286_v6, %s1600_s24  ;;  %1234 = vmatprep.subr.bf16.mxu0 %v1233_v8  ;;  %v1245_v18 = vpack.c.bf16 %v301_v17, %v300_v16  ;;  %v1249_v24 = vpack.c.bf16 %v303_v23, %v302_v22  ;;  %v304_v26 = vld [vmem:[#allocation7 + $0x20] sm:$0xff]  ;;  %v305_v27 = vld [vmem:[#allocation7 + $0x28] sm:$0xff]  ;;  %v306_v30 = vld [vmem:[#allocation7 + $0x30] sm:$0xff]  ;;  %597 = vst.msk [vmem:[#allocation3 + $0x21] ss:$8 sm:$0x3] %vm592_vm9, %v1599_v0 }
  0x71   : > { %v1253_v29 = vpack.c.bf16 %v305_v27, %v304_v26  ;;  %v307_v31 = vld [vmem:[#allocation7 + $0x38] sm:$0xff]  ;;  %v308_v33 = vld [vmem:[#allocation7 + $0x40] sm:$0xff]  ;;  %v487_v34 = vld [vmem:[#allocation7 + $0x90] sm:$0xff]  ;;  %594 = vst.msk [vmem:[#allocation3] ss:$8 sm:$0x3] %vm592_vm9, %v1599_v0 }
  0x72   : > { %v1257_v32 = vpack.c.bf16 %v307_v31, %v306_v30  ;;  %v488_v35 = vld [vmem:[#allocation7 + $0x98] sm:$0xff]  ;;  %v489_v36 = vld [vmem:[#allocation7 + $0xa0] sm:$0xff]  ;;  %v490_v37 = vld [vmem:[#allocation7 + $0xa8] sm:$0xff]  ;;  %603 = vst.msk [vmem:[#allocation3 + $0x20] sm:$0x3] %vm602_vm7, %v1599_v0  ;;  %vm599_vm10 = vcmask 64512  }
  0x73   : > { %1236 = vmatpush3.bf16.msra.mxu0 %v1233_v8  ;;  %v1261_v38 = vpack.c.bf16 %v488_v35, %v487_v34  ;;  %v1265_v39 = vpack.c.bf16 %v490_v37, %v489_v36  ;;  %v491_v41 = vld [vmem:[#allocation7 + $0xb0] sm:$0xff]  ;;  %v492_v42 = vld [vmem:[#allocation7 + $0xb8] sm:$0xff]  ;;  %v493_v45 = vld [vmem:[#allocation7 + $0xc0] sm:$0xff]  ;;  %608 = vst.msk [vmem:[#allocation3 + $0x28] sm:$0x3] %vm607_vm8, %v1599_v0  ;;  %vm604_vm11 = vcmask 130112  }
  0x74   : > { %1238 = vmatprep.subr.bf16.mxu0 %v1237_v11  ;;  %v1269_v44 = vpack.c.bf16 %v492_v42, %v491_v41  ;;  %v494_v46 = vld [vmem:[#allocation7 + $0xc8] sm:$0xff]  ;;  %v495_v48 = vld [vmem:[#allocation7 + $0xd0] sm:$0xff]  ;;  %v864_v52 = vld [vmem:[#allocation9 + $0x120] sm:$0xff]  ;;  %600 = vst.msk [vmem:[#allocation3] sm:$0xff] %vm599_vm10, %v1599_v0  ;;  %vm611_vm12 = vcmask 1040384   ;;  %s1602_s16 = smov 8  }
  0x75   : > { %v1273_v47 = vpack.c.bf16 %v494_v46, %v493_v45  ;;  %v662_v50 = vld [vmem:[#allocation9 + $0x90] sm:$0xff]  ;;  %v663_v51 = vld [vmem:[#allocation9 + $0x98] sm:$0xff]  ;;  %v865_v56 = vld [vmem:[#allocation9 + $0x128] sm:$0xff]  ;;  %605 = vst.msk [vmem:[#allocation3 + $0x8] sm:$0xff] %vm604_vm11, %v1599_v0  ;;  %vm631_vm13 = vcmask 1040448   ;;  %vm633_vm14 = vcmask 57344  }
  0x76   : > { %v1278_v55 = vpack.c.bf16 %v663_v51, %v662_v50  ;;  %v664_v57 = vld [vmem:[#allocation9 + $0xa0] sm:$0xff]  ;;  %v665_v58 = vld [vmem:[#allocation9 + $0xa8] sm:$0xff]  ;;  %v1332_v59 = vpack.c.bf16 %v865_v56, %v864_v52  ;;  %v866_v60 = vld [vmem:[#allocation9 + $0x130] sm:$0xff]  ;;  %601 = vst.msk [vmem:[#allocation3 + $0x10] sm:$0xff] %vm599_vm10, %v1599_v0  ;;  %vm624_vm15 = vcmask 1047617   ;;  %vm626_vm0 = vcmask 64513  }
  0x77   : > { %1240 = vmatpush3.bf16.msra.mxu0 %v1237_v11  ;;  %v867_v61 = vld [vmem:[#allocation9 + $0x138] sm:$0xff]  ;;  %v1281_v62 = vpack.c.bf16 %v665_v58, %v664_v57  ;;  %v666_v1 = vld [vmem:[#allocation9 + $0xb0] sm:$0xff]  ;;  %v868_v3 = vld [vmem:[#allocation9 + $0x140] sm:$0xff]  ;;  %606 = vst.msk [vmem:[#allocation3 + $0x18] sm:$0xff] %vm604_vm11, %v1599_v0  ;;  %vm628_vm1 = vcmask 1047616   ;;  %vm686_vm2 = vcmask 1046528  }
  0x78   : > { %1242 = vmatprep.subr.bf16.mxu0 %v1241_v14  ;;  %1279 = vmatpush1.bf16.msra.mxu1 %v1278_v55  ;;  %v1335_v63 = vpack.c.bf16 %v867_v61, %v866_v60  ;;  %v667_v2 = vld [vmem:[#allocation9 + $0xb8] sm:$0xff]  ;;  %v869_v4 = vld [vmem:[#allocation9 + $0x148] sm:$0xff]  ;;  %v668_v7 = vld [vmem:[#allocation9 + $0xc0] sm:$0xff]  ;;  %vm699_vm3 = vcmask 130048   ;;  %vm886_vm4 = vcmask 1045504   ;;  %s271_s13 = scalar_lea.vmem [#allocation10], %s1108_s6 }
  0x79   : > { %1280 = vmatprep.subr.bf16.mxu1 %v1601_v54  ;;  %v1284_v5 = vpack.c.bf16 %v667_v2, %v666_v1  ;;  %v1338_v6 = vpack.c.bf16 %v869_v4, %v868_v3  ;;  %v669_v8 = vld [vmem:[#allocation9 + $0xc8] sm:$0xff]  ;;  %v870_v9 = vld [vmem:[#allocation9 + $0x150] sm:$0xff]  ;;  %v871_v10 = vld [vmem:[#allocation9 + $0x158] sm:$0xff]  ;;  %s1007_s9 = sshll.u32 %s271_s13, 4  ;;  %s1132_s30 = sshll.u32 %s1656_s22, 8  ;;  %s1918_s9 = int_to_ptr.vmem [resolvable:$true] %s1007_s9 }
  0x7a   : > { %v1287_v11 = vpack.c.bf16 %v669_v8, %v668_v7  ;;  %v1341_v12 = vpack.c.bf16 %v871_v10, %v870_v9  ;;  %v670_v13 = vld [vmem:[#allocation9 + $0xd0] sm:$0xff]  ;;  %v873_v16 = vld [vmem:[#allocation9 + $0x168] sm:$0xff]  ;;  %v875_v23 = vld [vmem:[#allocation9 + $0x178] sm:$0xff]  ;;  %s1923_s7 = scalar_lea.hbm %s1973_s5, %s1132_s30  ;;  %s994_s8 = scalar_lea.sflag [#allocation6], %s1816_s14 }
  0x7b   : > { %1244 = vmatpush3.bf16.msra.mxu0 %v1241_v14  ;;  %v671_v14 = vld [vmem:[#allocation9 + $0xd8] sm:$0xff]  ;;  %v874_v22 = vld [vmem:[#allocation9 + $0x170] sm:$0xff]  ;;  %v1118_v30 = vld [vmem:[%s1970_s2] ss:$0 sm:$0xff]  ;;  %s1522_s12 = scalar_lea.vmem %s1918_s9, 256  ;;  %p1987_p0 = scmp.ne.s32.totalorder %s1982_s23, 0 }
  0x7c   : > { %1182 = vmatprep.subr.mxu0 %v320_v15  ;;  %1282 = vmatpush1.bf16.msra.mxu1 %v1281_v62  ;;  %v1290_v17 = vpack.c.bf16 %v671_v14, %v670_v13  ;;  %v675_v26 = vld [vmem:[#allocation9 + $0xf8] sm:$0xff]  ;;  %v677_v0 = vld [vmem:[#allocation9 + $0x108] sm:$0xff]  ;;  %v678_v37 = vld [vmem:[#allocation9 + $0x110] sm:$0xff]  ;;  %p1523_p11 = scmp.ne.s32.totalorder %s1918_s9, %s1522_s12  ;;  %s1603_s22 = smov [#allocation10]  }
  0x7d   : > { %1283 = vmatprep.subr.bf16.mxu1 %v1601_v54  ;;  %v879_v36 = vld [vmem:[#allocation9 + $0x198] sm:$0xff]  ;;  %v880_v42 = vld [vmem:[#allocation9 + $0x1a0] sm:$0xff]  ;;  %v640_v61 = vld [vmem:[#allocation9 + $0x8] sm:$0xff]  ;;  %s1526_s6 = sshll.u32 %s1603_s22, 4  ;;  %s1527_s6 = int_to_ptr.vmem [resolvable:$false] %s1526_s6 }
  0x7e   : > { %v639_v60 = vld [vmem:[#allocation9] sm:$0xff]  ;;  %v641_v13 = vld [vmem:[#allocation9 + $0x10] sm:$0xff]  ;;  %p1524_p2 = pnand %p1523_p11, %p1987_p0  ;;  %s1528_s24 = scalar_lea.vmem %s1527_s6, 512 }
  0x7f   : > { %1183 = vmatpush3.msra.mxu0 %v320_v15  ;;  %v872_v15 = vld [vmem:[#allocation9 + $0x160] sm:$0xff]  ;;  %p1529_p7 = scmp.lt.s32.totalorder %s1918_s9, %s1527_s6  ;;  %p1530_p9 = scmp.lt.s32.totalorder %s1528_s24, %s1522_s12 }
  0x80   : > { %1246 = vmatprep.subr.bf16.mxu0 %v1245_v18  ;;  %1285 = vmatpush1.bf16.msra.mxu1 %v1284_v5  ;;  %p1525_p3 = pneg %p1524_p2 }
  0x81   : > { %1286 = vmatprep.subr.bf16.mxu1 %v1601_v54  ;;  %p1531_p12 = por %p1530_p9, %p1529_p7 }
  0x83   : > { %p1532_p1 = pnand %p1531_p12, %p1525_p3 }
  0x84   : > { %1288 = vmatpush1.bf16.msra.mxu1 %v1287_v11  ;;  %v1305_v11 = vpack.c.bf16 %v640_v61, %v639_v60 }
  0x85   : > { %1289 = vmatprep.subr.bf16.mxu1 %v1601_v54 }
  0x88   : > { %1291 = vmatpush1.bf16.msra.mxu1 %v1290_v17 }
  0x89   : > { %1292 = vmatprep.subr.bf16.mxu1 %v1601_v54 }
  0xde   : > { %v290_v19 = vpop.permute.xlu0 %289 }
  0xdf   : > { %296 = vst.msk [vmem:[#allocation2 + $0x1] sm:$0xff] %vm295_vm5, %v290_v19  ;;  %v672_v19 = vld [vmem:[#allocation9 + $0xe0] sm:$0xff] }
  0xe2   : > { %v292_v20 = vpop.permute.xlu0 %291 }
  0xe3   : > { %297 = vst.msk [vmem:[#allocation2 + $0x9] sm:$0xff] %vm295_vm5, %v292_v20  ;;  %v673_v20 = vld [vmem:[#allocation9 + $0xe8] sm:$0xff] }
  0xe6   : > { %v309_v21 = vld [vmem:[#allocation2 + $0x1] sm:$0xff] }
  0xe7   : > { %1184 = vmatprep.mubr.msk.f32.mxu0 %vm321_vm6, %v309_v21  ;;  %v298_v28 = vld [vmem:[#allocation2] sm:$0xff]  ;;  %v1293_v21 = vpack.c.bf16 %v673_v20, %v672_v19  ;;  %v642_v19 = vld [vmem:[#allocation9 + $0x18] sm:$0xff] }
  0xe9   : > { %1294 = vmatpush1.bf16.msra.mxu1 %v1293_v21 }
  0xea   : > { %v310_v25 = vld [vmem:[#allocation2 + $0x9] sm:$0xff]  ;;  %1295 = vmatprep.subr.bf16.mxu1 %v1601_v54 }
  0xeb   : > { %1185 = vmatmul.mubr.msk.f32.vlgmr.msra.gmra.mrb[0].mxu0 %vm321_vm6, %v310_v25  ;;  %v299_v40 = vld [vmem:[#allocation2 + $0x8] sm:$0xff]  ;;  %v674_v25 = vld [vmem:[#allocation9 + $0xf0] sm:$0xff] }
  0xec   : > { %1248 = vmatpush3.bf16.msra.mxu0 %v1245_v18  ;;  %1205 = vmatprep.mubr.msk.f32.mxu0 %vm321_vm6, %v298_v28  ;;  %v484_v43 = vld [vmem:[#allocation2 + $0x2] sm:$0xff]  ;;  %v485_v49 = vld [vmem:[#allocation2 + $0xa] sm:$0xff]  ;;  %v1344_v18 = vpack.c.bf16 %v873_v16, %v872_v15  ;;  %v1296_v27 = vpack.c.bf16 %v675_v26, %v674_v25  ;;  %v1308_v25 = vpack.c.bf16 %v642_v19, %v641_v13 }
  0xed   : > { %1250 = vmatprep.subr.bf16.mxu0 %v1249_v24  ;;  %v876_v28 = vld [vmem:[#allocation9 + $0x180] sm:$0xff] }
  0xee   : > { %1297 = vmatpush1.bf16.msra.mxu1 %v1296_v27  ;;  %v643_v27 = vld [vmem:[#allocation9 + $0x20] sm:$0xff] }
  0xef   : > { %1298 = vmatprep.subr.bf16.mxu1 %v1601_v54 }
  0xf0   : > { %1252 = vmatpush3.bf16.msra.mxu0 %v1249_v24  ;;  %v1347_v24 = vpack.c.bf16 %v875_v23, %v874_v22 }
  0xf1   : > { %1254 = vmatprep.subr.bf16.mxu0 %v1253_v29 }
  0xf4   : > { %1256 = vmatpush3.bf16.msra.mxu0 %v1253_v29  ;;  %v877_v29 = vld [vmem:[#allocation9 + $0x188] sm:$0xff] }
  0xf5   : > { %1258 = vmatprep.subr.bf16.mxu0 %v1257_v32  ;;  %v1350_v31 = vpack.c.bf16 %v877_v29, %v876_v28  ;;  %v644_v28 = vld [vmem:[#allocation9 + $0x28] sm:$0xff] }
  0xf8   : > { %1260 = vmatpush3.bf16.msra.mxu0 %v1257_v32  ;;  %v676_v32 = vld [vmem:[#allocation9 + $0x100] sm:$0xff] }
  0xf9   : > { %1203 = vmatprep.subr.mxu0 %v308_v33  ;;  %v1299_v35 = vpack.c.bf16 %v677_v0, %v676_v32  ;;  %v1311_v32 = vpack.c.bf16 %v644_v28, %v643_v27  ;;  %v645_v0 = vld [vmem:[#allocation9 + $0x30] sm:$0xff] }
  0xfb   : > { %1300 = vmatpush1.bf16.msra.mxu1 %v1299_v35  ;;  %v647_v35 = vld [vmem:[#allocation9 + $0x40] sm:$0xff] }
  0xfc   : > { %1204 = vmatpush3.msra.mxu0 %v308_v33  ;;  %v878_v33 = vld [vmem:[#allocation9 + $0x190] sm:$0xff]  ;;  %1301 = vmatprep.subr.bf16.mxu1 %v1601_v54 }
  0xfd   : > { %1206 = vmatmul.mubr.msk.f32.vlgmr.msra.gmra.mrb[0].mxu0 %vm321_vm6, %v299_v40  ;;  %1262 = vmatprep.subr.bf16.mxu0 %v1261_v38  ;;  %v1353_v41 = vpack.c.bf16 %v879_v36, %v878_v33  ;;  %v646_v33 = vld [vmem:[#allocation9 + $0x38] sm:$0xff]  ;;  %v648_v36 = vld [vmem:[#allocation9 + $0x48] sm:$0xff] }
  0xfe   : > { %1264 = vmatpush3.bf16.msra.mxu0 %v1261_v38  ;;  %1226 = vmatprep.mubr.msk.f32.mxu0 %vm321_vm6, %v484_v43  ;;  %v679_v38 = vld [vmem:[#allocation9 + $0x118] sm:$0xff]  ;;  %v881_v43 = vld [vmem:[#allocation9 + $0x1a8] sm:$0xff] }
  0xff   : > { %1266 = vmatprep.subr.bf16.mxu0 %v1265_v39  ;;  %v1302_v46 = vpack.c.bf16 %v679_v38, %v678_v37  ;;  %v1317_v37 = vpack.c.bf16 %v648_v36, %v647_v35  ;;  %v649_v38 = vld [vmem:[#allocation9 + $0x50] sm:$0xff] }
 0x101   : > { %1303 = vmatpush1.bf16.msra.mxu1 %v1302_v46 }
 0x102   : > { %1268 = vmatpush3.bf16.msra.mxu0 %v1265_v39  ;;  %1304 = vmatprep.subr.bf16.mxu1 %v1601_v54 }
 0x103   : > { %1270 = vmatprep.subr.bf16.mxu0 %v1269_v44 }
 0x106   : > { %1272 = vmatpush3.bf16.msra.mxu0 %v1269_v44 }
 0x107   : > { %1274 = vmatprep.subr.bf16.mxu0 %v1273_v47 }
 0x10a   : > { %1276 = vmatpush3.bf16.msra.mxu0 %v1273_v47 }
 0x10b   : > { %1224 = vmatprep.subr.mxu0 %v495_v48 }
 0x10e   : > { %1225 = vmatpush3.msra.mxu0 %v495_v48  ;;  %v1356_v48 = vpack.c.bf16 %v881_v43, %v880_v42  ;;  %v652_v42 = vld [vmem:[#allocation9 + $0x68] sm:$0xff] }
 0x10f   : > { %1227 = vmatmul.mubr.msk.f32.vlgmr.msra.gmra.mrb[0].mxu0 %vm321_vm6, %v485_v49  ;;  %1331 = vmatprep.subr.bf16.mxu0 %v1601_v54 }
 0x110   : > { %1333 = vmatpush1.bf16.msra.mxu0 %v1332_v59 }
 0x111   : > { %1334 = vmatprep.subr.bf16.mxu0 %v1601_v54 }
 0x114   : > { %1336 = vmatpush1.bf16.msra.mxu0 %v1335_v63 }
 0x115   : > { %1337 = vmatprep.subr.bf16.mxu0 %v1601_v54 }
 0x118   : > { %1339 = vmatpush1.bf16.msra.mxu0 %v1338_v6 }
 0x119   : > { %1340 = vmatprep.subr.bf16.mxu0 %v1601_v54 }
 0x11c   : > { %1342 = vmatpush1.bf16.msra.mxu0 %v1341_v12 }
 0x11d   : > { %1343 = vmatprep.subr.bf16.mxu0 %v1601_v54 }
 0x120   : > { %1345 = vmatpush1.bf16.msra.mxu0 %v1344_v18 }
 0x121   : > { %1346 = vmatprep.subr.bf16.mxu0 %v1601_v54 }
 0x124   : > { %1348 = vmatpush1.bf16.msra.mxu0 %v1347_v24 }
 0x125   : > { %1349 = vmatprep.subr.bf16.mxu0 %v1601_v54 }
 0x128   : > { %1351 = vmatpush1.bf16.msra.mxu0 %v1350_v31 }
 0x129   : > { %1352 = vmatprep.subr.bf16.mxu0 %v1601_v54 }
 0x12c   : > { %1354 = vmatpush1.bf16.msra.mxu0 %v1353_v41  ;;  %v651_v41 = vld [vmem:[#allocation9 + $0x60] sm:$0xff] }
 0x12d   : > { %1355 = vmatprep.subr.bf16.mxu0 %v1601_v54  ;;  %v1323_v43 = vpack.c.bf16 %v652_v42, %v651_v41 }
 0x130   : > { %1357 = vmatpush1.bf16.msra.mxu0 %v1356_v48  ;;  %v656_v48 = vld [vmem:[#allocation9 + $0x88] sm:$0xff] }
 0x1e2   : > { %v1228_v34 = vpop.f32.mrb[0].mxu0 }
 0x1e3   : > { %v587_v39 = vadd.f32 %v1228_v34, %v1118_v30  ;;  %v568_v40 = vpop.f32.mrb[1].mxu0  ;;  %v1314_v34 = vpack.c.bf16 %v646_v33, %v645_v0 }
 0x1e4   : > { %v586_v44 = vadd.f32 %v1118_v30, %v568_v40 }
 0x1e5   : > { %v589_v45 = vmax.f32 %v587_v39, 0.0  ;;  %v650_v39 = vld [vmem:[#allocation9 + $0x58] sm:$0xff] }
 0x1e6   : > { %v588_v47 = vmax.f32 %v586_v44, 0.0  ;;  %v1320_v40 = vpack.c.bf16 %v650_v39, %v649_v38  ;;  %v653_v44 = vld [vmem:[#allocation9 + $0x70] sm:$0xff] }
 0x1e7   : > { %v613_v49 = vrot.slane %v589_v45, 7  ;;  %v654_v45 = vld [vmem:[#allocation9 + $0x78] sm:$0xff] }
 0x1e8   : > { %v612_v50 = vrot.slane %v588_v47, 7  ;;  %v1326_v46 = vpack.c.bf16 %v654_v45, %v653_v44  ;;  %v655_v47 = vld [vmem:[#allocation9 + $0x80] sm:$0xff] }
 0x1e9   : > { %619 = vrot.lane.b32.xlu0 %v613_v49, %s1602_s16 }
 0x1ea   : > { %615 = vrot.lane.b32.xlu1 %v612_v50, %s1602_s16  ;;  %v614_v51 = vsel %vm611_vm12, %v612_v50, %v613_v49  ;;  %v1329_v49 = vpack.c.bf16 %v656_v48, %v655_v47 }
 0x1ee   : > { %617 = vrot.lane.b32.xlu1 %v614_v51, %s1602_s16 }
 0x25b   : > { %v620_v52 = vpop.permute.xlu0 %619 }
 0x25c   : > { %632 = vst.msk [vmem:[#allocation3 + $0x20] sm:$0x1] %vm631_vm13, %v620_v52  ;;  %v616_v53 = vpop.permute.xlu1 %615 }
 0x25d   : > { %634 = vst.msk [vmem:[#allocation3 + $0x28] sm:$0x1] %vm633_vm14, %v620_v52 }
 0x25e   : > { %625 = vst.msk [vmem:[#allocation3] sm:$0xfe] %vm624_vm15, %v616_v53 }
 0x25f   : > { %627 = vst.msk [vmem:[#allocation3 + $0x8] sm:$0xfe] %vm626_vm0, %v616_v53 }
 0x260   : > { %v618_v55 = vpop.permute.xlu1 %617 }
 0x261   : > { %629 = vst.msk [vmem:[#allocation3 + $0x10] sm:$0xff] %vm628_vm1, %v618_v55 }
 0x262   : > { %630 = vst.msk [vmem:[#allocation3 + $0x18] sm:$0xff] %vm599_vm10, %v618_v55 }
 0x263   : > { %v659_v18 = vld [vmem:[#allocation3 + $0x20] sm:$0x1] }
 0x264   : > { %v660_v62 = vld [vmem:[#allocation3 + $0x28] sm:$0x1]  ;;  %v861_v20 = vld [vmem:[#allocation3 + $0x20] sm:$0x3]  ;;  %v693_v24 = vrot.slane %v659_v18, 1 }
 0x265   : > { %v657_v58 = vld [vmem:[#allocation3] sm:$0xfe]  ;;  %v862_v10 = vld [vmem:[#allocation3 + $0x28] sm:$0x3]  ;;  %v695_v12 = vrot.slane %v660_v62, 1  ;;  %v893_v26 = vrot.slane %v861_v20, 2 }
 0x266   : > { %v658_v56 = vld [vmem:[#allocation3 + $0x8] sm:$0xfe]  ;;  %v859_v59 = vld [vmem:[#allocation3] sm:$0xfc]  ;;  %v687_v4 = vrot.slane %v657_v58, 1  ;;  %v895_v21 = vrot.slane %v862_v10, 2 }
 0x267   : > { %v860_v57 = vld [vmem:[#allocation3 + $0x8] sm:$0xfc]  ;;  %v690_v1 = vrot.slane %v658_v56, 1  ;;  %v887_v5 = vrot.slane %v859_v59, 2  ;;  %v635_v50 = vld [vmem:[#allocation3] sm:$0xff] }
 0x268   : > { %v890_v2 = vrot.slane %v860_v57, 2  ;;  %v1882_v3 = vld [vmem:[#allocation3 + $0x10] sm:$0xff]  ;;  %v636_v31 = vld [vmem:[#allocation3 + $0x8] sm:$0xff] }
 0x269   : > { %v1880_v63 = vld [vmem:[#allocation3 + $0x18] sm:$0xff]  ;;  %v688_v8 = vrot.slane %v1882_v3, 1  ;;  %v888_v9 = vrot.slane %v1882_v3, 2  ;;  %v1125_v62 = vld [vmem:[%s1972_s4] ss:$0 sm:$0xff] }
 0x26a   : > { %v691_v6 = vrot.slane %v1880_v63, 1  ;;  %v891_v7 = vrot.slane %v1880_v63, 2 }
 0x26b   : > { %v689_v16 = vsel %vm686_vm2, %v687_v4, %v688_v8  ;;  %v889_v17 = vsel %vm886_vm4, %v887_v5, %v888_v9  ;;  %v694_v29 = vsel %vm686_vm2, %v688_v8, %v693_v24  ;;  %v894_v30 = vsel %vm886_vm4, %v888_v9, %v893_v26 }
 0x26c   : > { %v692_v14 = vsel %vm686_vm2, %v690_v1, %v691_v6  ;;  %v892_v15 = vsel %vm886_vm4, %v890_v2, %v891_v7  ;;  %v696_v22 = vsel %vm686_vm2, %v691_v6, %v695_v12  ;;  %v896_v23 = vsel %vm886_vm4, %v891_v7, %v895_v21 }
 0x26d   : > { %1119 = vmatprep.mubr.msk.f32.mxu1 %vm699_vm3, %v692_v14  ;;  %1123 = vmatprep.mubr.msk.f32.mxu0 %vm699_vm3, %v892_v15 }
 0x26e   : > { %769 = vmatmul.mubr.f32.vlgmr.msra.gmra.mrb[0].mxu1 %v689_v16  ;;  %968 = vmatmul.mubr.f32.vlgmr.msra.gmra.mrb[2].mxu0 %v889_v17 }
 0x26f   : > { %1306 = vmatpush1.bf16.msra.mxu1 %v1305_v11  ;;  %1120 = vmatprep.mubr.msk.f32.mxu1 %vm699_vm3, %v696_v22 }
 0x270   : > { %1124 = vmatprep.mubr.msk.f32.mxu0 %vm699_vm3, %v896_v23  ;;  %1307 = vmatprep.subr.bf16.mxu1 %v1601_v54 }
 0x272   : > { %774 = vmatmul.mubr.f32.gmra.mrb[2].mxu1 %v694_v29  ;;  %973 = vmatmul.mubr.f32.gmra.mrb[4].mxu0 %v894_v30 }
 0x273   : > { %1309 = vmatpush1.bf16.msra.mxu1 %v1308_v25  ;;  %1121 = vmatprep.mubr.msk.f32.mxu1 %vm699_vm3, %v636_v31 }
 0x274   : > { %1310 = vmatprep.subr.bf16.mxu1 %v1601_v54 }
 0x277   : > { %1312 = vmatpush1.bf16.msra.mxu1 %v1311_v32 }
 0x278   : > { %1313 = vmatprep.subr.bf16.mxu1 %v1601_v54 }
 0x27b   : > { %1315 = vmatpush1.bf16.msra.mxu1 %v1314_v34 }
 0x27c   : > { %1316 = vmatprep.subr.bf16.mxu1 %v1601_v54 }
 0x27f   : > { %1318 = vmatpush1.bf16.msra.mxu1 %v1317_v37 }
 0x280   : > { %1319 = vmatprep.subr.bf16.mxu1 %v1601_v54 }
 0x283   : > { %1321 = vmatpush1.bf16.msra.mxu1 %v1320_v40 }
 0x284   : > { %1322 = vmatprep.subr.bf16.mxu1 %v1601_v54 }
 0x287   : > { %1324 = vmatpush1.bf16.msra.mxu1 %v1323_v43 }
 0x288   : > { %1325 = vmatprep.subr.bf16.mxu1 %v1601_v54 }
 0x28b   : > { %1327 = vmatpush1.bf16.msra.mxu1 %v1326_v46 }
 0x28c   : > { %1328 = vmatprep.subr.bf16.mxu1 %v1601_v54 }
 0x28f   : > { %1330 = vmatpush1.bf16.msra.mxu1 %v1329_v49 }
 0x292   : > { %849 = vmatmul.mubr.f32.vlgmr.msra.gmra.mrb[4].mxu1 %v635_v50 }
 0x293   : > { %1122 = vmatprep.mubr.msk.f32.mxu1 %vm699_vm3, %v1880_v63 }
 0x296   : > { %854 = vmatmul.mubr.f32.gmra.mrb[6].mxu1 %v1882_v3 }
 0x341   : > { %v770_v51 = vpop.f32.mrb[0].mxu1  ;;  %v969_v52 = vpop.f32.mrb[2].mxu0 }
 0x342   : > { %v772_v53 = vpop.f32.mrb[1].mxu1  ;;  %v971_v55 = vpop.f32.mrb[3].mxu0 }
 0x345   : > { %v775_v56 = vpop.f32.mrb[2].mxu1  ;;  %v974_v57 = vpop.f32.mrb[4].mxu0 }
 0x346   : > { %v777_v58 = vpop.f32.mrb[3].mxu1  ;;  %v976_v59 = vpop.f32.mrb[5].mxu0 }
 0x365   : > { %v850_v60 = vpop.f32.mrb[4].mxu1 }
 0x366   : > { %v851_v54 = vadd.f32 %v850_v60, %v770_v51  ;;  %v852_v61 = vpop.f32.mrb[5].mxu1 }
 0x368   : > { %v978_v63 = vadd.f32 %v969_v52, %v851_v54 }
 0x369   : > { %v855_v1 = vpop.f32.mrb[6].mxu1 }
 0x36a   : > { %v987_v2 = vadd.f32 %v1125_v62, %v978_v63  ;;  %v856_v3 = vadd.f32 %v855_v1, %v775_v56  ;;  %v857_v4 = vpop.f32.mrb[7].mxu1 }
 0x36c   : > { %v989_v5 = vmax.f32 %v987_v2, 0.0  ;;  %v979_v6 = vadd.f32 %v974_v57, %v856_v3 }
 0x36e   : > { %991 = vst [vmem:[%s271_s13] sm:$0xff] %v989_v5  ;;  %v988_v7 = vadd.f32 %v1125_v62, %v979_v6 }
 0x370   : > { %v990_v8 = vmax.f32 %v988_v7, 0.0 }
 0x372   : > { %992 = vst [vmem:[%s271_s13 + $0x8] sm:$0xff] %v990_v8 }
 0x373   : > { %1535 = shalt.err (!%p1532_p1)
}
 0x374   : > { %s1536_s26 = scalar_lea.hbm %s1923_s7, 256  ;;  %s1540_s28 = scalar_lea.hbm %s1973_s5, 512 }
 0x375   : > { %p1537_p13 = scmp.ne.s32.totalorder %s1923_s7, %s1536_s26  ;;  %p1541_p4 = scmp.lt.u32.totalorder %s1923_s7, %s1973_s5 }
 0x376   : > { %p1542_p5 = scmp.lt.u32.totalorder %s1540_s28, %s1536_s26  ;;  %p1544_p11 = scmp.lt.u32.totalorder %s1536_s26, %s1923_s7 }
 0x377   : > { %p1538_p6 = pnand %p1537_p13, %p1987_p0 }
 0x378   : > { %p1543_p8 = por %p1542_p5, %p1541_p4 }
 0x379   : > { %p1539_p10 = pneg %p1538_p6 }
 0x37a   : > { %p1545_p2 = por %p1544_p11, %p1543_p8 }
 0x37c   : > { %p1546_p3 = pnand %p1545_p2, %p1539_p10 }
 0x37e   : > { %1549 = shalt.err (!%p1546_p3)
}
 0x37f   : > { %s1604_s11 = smov 128  }
 0x380   : > { %1372 = dma.vmem_to_hbm [thread:$0]  (%p1987_p0), %s1918_s9, 256, %s1923_s7, %s994_s8, %s1604_s11, %s1604_s11, %s1602_s16  }
 0x381 PF: > { %s1022_s17 = sand.u32 1, %s1580_s18   ;;  %p1988_p7 = scmp.ne.s32.totalorder %s1978_s25, 0 }
 0x382   : > { %p1989_p9 = scmp.ge.s32.totalorder %s1592_s21, 2  ;;  %s1023_s12 = scalar_lea.sflag [#allocation6], %s1022_s17 }
 0x384   : > { %p1386_p12 = pnand %p1989_p9, %p1988_p7 }
 0x386   : > { %1575 = dma.done.wait (!%p1386_p12), %s1023_s12, 256  }
 0x387   : > { %1577 = vsyncadd (!%p1386_p12), %s1023_s12, 4294967040  ;;  %p19_p1 = scmp.ge.s32.totalorder %s1751_s29, 4   ;;  %s1990_s18 = smov %s1584_s19 }
 0x388   : > { %s1991_s19 = smov %s1588_s20  ;;  %s1992_s20 = smov %s1767_s27 }
 0x389   : > { %s1993_s21 = smov %s1751_s29  ;;  %21 = sbr.rel (!%p19_p1) target bundleno = 6 (0x6), region = 98 }
 0x390   :  { %1028 = vsyncpa [#allocation5], 1 }
 0x391   :  { %1030 = vsyncpa [#allocation5 + $0x1], 1 }
 0x392   :  { %1031 = vsyncpa [#allocation8], 1 }
 0x393   :  { %1032 = vsyncpa [#allocation6], 1 }
 0x394   :  { %1034 = vsyncpa [#allocation6 + $0x1], 1 }

</bundles_post_ra>
